<compile_context>
chip_gen: v6e
topology: v6e:2x2x1
jax: 0.10.0
libtpu: 0.0.40
codegen_flags: <defaults>
</compile_context>

<pallas_src>
import jax
import jax.numpy as jnp
from jax.experimental import pallas as pl
from jax.experimental.pallas import tpu as pltpu


def _pick_row_tile(Ho, N, Wo, Cout, out_itemsize, max_tile_bytes=2 << 20):
    """Largest divisor of Ho whose output tile fits the byte budget while
    keeping >= 4 grid steps when possible (v7x megacore: >= 2 per core)."""
    divisors = [d for d in range(1, Ho + 1) if Ho % d == 0]
    fits = [d for d in divisors if d * Wo * Cout * out_itemsize <= max_tile_bytes]
    good = [d for d in fits if N * (Ho // d) >= 4]
    if good:
        return max(good)
    return max(fits) if fits else 1


# ----------------------------------------------------------------------------
# Kernel 1: weight-norm reparametrization  w = g * v / ||v||_2   (runs once)
# ----------------------------------------------------------------------------
def _weight_prep_kernel(v_ref, g_ref, w_ref):
    # v_ref : (K, Cout) f32, K ordered (kh, kw, Cin)  -- GEMM-ready layout
    # g_ref : (1, Cout) f32
    # w_ref : (K, Cout) compute dtype
    v = v_ref[...]
    norm = jnp.sqrt(jnp.sum(v * v, axis=0, keepdims=True))          # (1, Cout)
    # No epsilon: matches PyTorch weight_norm (an all-zero filter -> inf/nan).
    w_ref[...] = (v * (g_ref[...] / norm)).astype(w_ref.dtype)


# ----------------------------------------------------------------------------
# Kernel 2: implicit-GEMM conv.  One grid step = (batch item, output-row tile)
# ----------------------------------------------------------------------------
def _make_conv_kernel(kh, kw, th, Wo, Cin, Cout):
    def kernel(x_ref, w_ref, b_ref, o_ref):
        # x_ref : (Hp, Wp, Cin)       padded NHWC image, resident per batch n
        # w_ref : (kh*kw, Cin, Cout)  normalized weights, resident
        # b_ref : (1, Cout) f32       bias
        # o_ref : (th, Wo, Cout)      output row tile (NHWC, no lane padding)
        h0 = pl.program_id(1) * th
        acc = jnp.zeros((th * Wo, Cout), jnp.float32)
        for i in range(kh):                       # fused im2col: loop the taps
            for j in range(kw):
                patch = x_ref[pl.ds(h0 + i, th), pl.ds(j, Wo), :]   # (th,Wo,Cin)
                # NOTE: reshape assumes Wo is a multiple of the sublane tile
                # (8 f32 / 16 bf16); true for the shapes used here.
                acc += jnp.dot(patch.reshape(th * Wo, Cin),
                               w_ref[i * kw + j],
                               preferred_element_type=jnp.float32)
        acc += b_ref[...]
        o_ref[...] = acc.reshape(th, Wo, Cout).astype(o_ref.dtype)
    return kernel


# ----------------------------------------------------------------------------
# Wrapper
# ----------------------------------------------------------------------------
def wn_conv2d(x, v, g, b, *, padding, compute_dtype=None, max_tile_bytes=2 << 20):
    """Weight-normalized Conv2d forward (stride 1).

    x : (N, Cin, H, W)       NCHW (matches nn.Conv2d)
    v : (Cout, Cin, kh, kw)  weight_norm 'v'
    g : (Cout,)              weight_norm 'g'
    b : (Cout,)              bias
    compute_dtype : MXU operand dtype (jnp.bfloat16 = native MXU path,
                    f32 accumulation).  Default: x.dtype.
    returns (N, Cout, Ho, Wo)
    """
    N, Cin, H, W = x.shape
    Cout, _, kh, kw = v.shape
    K = Cin * kh * kw
    Ho = H + 2 * padding - kh + 1
    Wo = W + 2 * padding - kw + 1
    Hp, Wp = H + 2 * padding, W + 2 * padding
    cdtype = jnp.dtype(compute_dtype) if compute_dtype is not None else x.dtype

    # Host glue: one cheap layout pass over x (NCHW -> padded NHWC). No im2col,
    # no M/K/Cout padding passes.
    x_nhwc = jnp.transpose(x, (0, 2, 3, 1)).astype(cdtype)
    x_pad = jnp.pad(x_nhwc,
                    ((0, 0), (padding, padding), (padding, padding), (0, 0)))

    # Weights flattened to (K, Cout) with K ordered (kh, kw, Cin) so the conv
    # kernel can index one (Cin, Cout) slab per tap.
    v_t = jnp.transpose(v, (2, 3, 1, 0)).reshape(K, Cout).astype(jnp.float32)
    g_row = g.reshape(1, Cout).astype(jnp.float32)
    b_row = b.reshape(1, Cout).astype(jnp.float32)

    # 1) weight-norm prep: exactly once, GEMM-ready layout & dtype.
    w_flat = pl.pallas_call(
        _weight_prep_kernel,
        out_shape=jax.ShapeDtypeStruct((K, Cout), cdtype),
    )(v_t, g_row)
    w_taps = w_flat.reshape(kh * kw, Cin, Cout)

    # 2) implicit-GEMM conv.
    th = _pick_row_tile(Ho, N, Wo, Cout, jnp.dtype(x.dtype).itemsize,
                        max_tile_bytes)
    grid = (N, Ho // th)

    in_bytes = jnp.dtype(cdtype).itemsize
    out_bytes = jnp.dtype(x.dtype).itemsize
    resident = (2 * Hp * Wp * Cin * in_bytes          # double-buffered image
                + kh * kw * Cin * Cout * in_bytes     # resident weights
                + Cout * 4                            # bias
                + 2 * th * Wo * Cout * out_bytes)     # double-buffered output
    vmem_limit = int(min(max(4 * resident, 16 << 20), 36 << 20))

    kernel = _make_conv_kernel(kh, kw, th, Wo, Cin, Cout)
    out_nhwc = pl.pallas_call(
        kernel,
        out_shape=jax.ShapeDtypeStruct((N, Ho, Wo, Cout), x.dtype),
        grid_spec=pltpu.PrefetchScalarGridSpec(
            num_scalar_prefetch=0,
            grid=grid,
            in_specs=[
                # Padded image for batch n: block index constant across the
                # fast row-tile axis -> fetched once per n, stays resident.
                pl.BlockSpec((None, Hp, Wp, Cin), lambda n, t: (n, 0, 0, 0)),
                # Weights / bias: constant block index -> resident for the
                # whole grid.
                pl.BlockSpec((kh * kw, Cin, Cout), lambda n, t: (0, 0, 0)),
                pl.BlockSpec((1, Cout), lambda n, t: (0, 0)),
            ],
            out_specs=pl.BlockSpec((None, th, Wo, Cout),
                                   lambda n, t: (n, t, 0, 0)),
        ),
        compiler_params=pltpu.CompilerParams(
            dimension_semantics=("parallel", "parallel"),
            vmem_limit_bytes=vmem_limit),
    )(x_pad, w_taps, b_row)

    # nn.Conv2d returns NCHW; this transpose is one pass over the un-inflated
    # output (skip it if the downstream consumer accepts NHWC).
    return jnp.transpose(out_nhwc, (0, 3, 1, 2))


# ----------------------------------------------------------------------------
# Pure-JAX reference (for correctness check)
# ----------------------------------------------------------------------------
def wn_conv2d_ref(x, v, g, b, *, padding):
    Cout = v.shape[0]
    norm = jnp.sqrt(jnp.sum(v.reshape(Cout, -1) ** 2, axis=1)).reshape(Cout, 1, 1, 1)
    w = v * (g.reshape(Cout, 1, 1, 1) / norm)
    out = jax.lax.conv_general_dilated(
        x, w, window_strides=(1, 1),
        padding=[(padding, padding), (padding, padding)],
        dimension_numbers=("NCHW", "OIHW", "NCHW"),
        precision=jax.lax.Precision.HIGHEST)
    return out + b.reshape(1, Cout, 1, 1)


if __name__ == "__main__":
    # WNConv2d(in_channels=4, out_channels=8, kernel_size=3, padding=1, bias=True)
    N, Cin, H, W = 2, 4, 16, 16
    Cout, kh, kw, pad = 8, 3, 3, 1

    key = jax.random.PRNGKey(0)
    kx, kv, kg, kb = jax.random.split(key, 4)
    x = jax.random.normal(kx, (N, Cin, H, W), dtype=jnp.float32)
    v = jax.random.normal(kv, (Cout, Cin, kh, kw), dtype=jnp.float32) * 0.1
    # weight_norm init sets g = ||v|| per output channel; perturb for generality.
    g = jnp.sqrt(jnp.sum(v.reshape(Cout, -1) ** 2, axis=1)) * \
        (1.0 + 0.1 * jax.random.normal(kg, (Cout,), dtype=jnp.float32))
    b = jax.random.normal(kb, (Cout,), dtype=jnp.float32) * 0.05

    ref = wn_conv2d_ref(x, v, g, b, padding=pad)

    # Default path: compute dtype = x.dtype (f32).  Tolerance covers TPU
    # default-matmul-precision (bf16-pass) differences between the Pallas MXU
    # path and the XLA reference conv.
    out = jax.block_until_ready(wn_conv2d(x, v, g, b, padding=pad))
    assert out.shape == (N, Cout, H, W), out.shape
    err = float(jnp.max(jnp.abs(out - ref)))
    assert jnp.allclose(out, ref, atol=3e-2, rtol=3e-2), err

    # bf16 MXU-operand path (perf option from the review), looser tolerance.
    out_bf16 = jax.block_until_ready(
        wn_conv2d(x, v, g, b, padding=pad, compute_dtype=jnp.bfloat16))
    err_bf16 = float(jnp.max(jnp.abs(out_bf16 - ref)))
    assert jnp.allclose(out_bf16, ref, atol=6e-2, rtol=6e-2), err_bf16

    print("KERNEL_OK")
</pallas_src>

<mosaic_0001>
module attributes {stable_mosaic.version = 11 : i64} {
  func.func @_weight_prep_kernel(%arg0: memref<36x8xf32, #tpu.memory_space<vmem>>, %arg1: memref<1x8xf32, #tpu.memory_space<vmem>>, %arg2: memref<36x8xf32, #tpu.memory_space<vmem>>) attributes {dimension_semantics = [], scalar_prefetch = 0 : i64, scratch_operands = 0 : i64, tpu.core_type = #tpu.core_type<tc>} {
    %c0 = arith.constant 0 : index
    %c0_0 = arith.constant 0 : index
    %0 = vector.load %arg0[%c0, %c0_0] : memref<36x8xf32, #tpu.memory_space<vmem>>, vector<36x8xf32>
    %1 = arith.mulf %0, %0 : vector<36x8xf32>
    %cst = arith.constant dense<0.000000e+00> : vector<8xf32>
    %2 = vector.multi_reduction <add>, %1, %cst [0] : vector<36x8xf32> to vector<8xf32>
    %3 = vector.shape_cast %2 : vector<8xf32> to vector<1x8xf32>
    %4 = math.sqrt %3 : vector<1x8xf32>
    %c0_1 = arith.constant 0 : index
    %c0_2 = arith.constant 0 : index
    %5 = vector.load %arg1[%c0_1, %c0_2] : memref<1x8xf32, #tpu.memory_space<vmem>>, vector<1x8xf32>
    %6 = arith.divf %5, %4 : vector<1x8xf32>
    %7 = vector.broadcast %6 : vector<1x8xf32> to vector<36x8xf32>
    %8 = arith.mulf %0, %7 : vector<36x8xf32>
    %c0_3 = arith.constant 0 : index
    %c0_4 = arith.constant 0 : index
    %9 = vector.load %arg2[%c0_3, %c0_4] : memref<36x8xf32, #tpu.memory_space<vmem>>, vector<36x8xf32>
    tpu.vector_store %arg2[%c0_3, %c0_4], %8 {strides = array<i32>} : memref<36x8xf32, #tpu.memory_space<vmem>>, vector<36x8xf32>,
    return
  }
}

</mosaic_0001>

<bundles_post_ra>
// kernel: tpu_custom_call.1
= control target key start
LH: loop header
LB: loop body
LE: loop exit
PB: predicated region body
PF: predicated region fallthrough
CT: control target
= control target key end

     0   :  { %vm21_vm0 = vcmask 64512   ;;  %vm29_vm1 = vcmask 60416   ;;  %v49_v30 = vlaneseq  ;;  %s130_s0 = inlined_call_operand.vmem [shape: f32[36,8], index: 0, kind: input, shape index: {}]   ;;  %s131_s1 = inlined_call_operand.vmem [shape: f32[1,8], index: 1, kind: input, shape index: {}]   ;;  %s132_s2 = inlined_call_operand.vmem [shape: f32[36,8], index: 2, kind: output, shape index: {}]  }
   0x1   :  { %v11_v0 = vld [vmem:[%s130_s0] sm:$0xff]  ;;  %v12_v1 = vld [vmem:[%s130_s0 + $0x8] sm:$0xff]  ;;  %v13_v2 = vld [vmem:[%s130_s0 + $0x10] sm:$0xff] }
   0x2   :  { %v14_v3 = vld [vmem:[%s130_s0 + $0x18] sm:$0xff]  ;;  %v15_v4 = vld [vmem:[%s130_s0 + $0x20] sm:$0xf]  ;;  %v16_v5 = vmul.f32 %v11_v0, %v11_v0  ;;  %v17_v6 = vmul.f32 %v12_v1, %v12_v1  ;;  %v18_v7 = vmul.f32 %v13_v2, %v13_v2  ;;  %v50_v31 = vshrl.u32 %v49_v30, 7 }
   0x3   :  { %v19_v8 = vmul.f32 %v14_v3, %v14_v3  ;;  %v20_v9 = vmul.f32 %v15_v4, %v15_v4  ;;  %v45_v32 = vld [vmem:[%s131_s1] sm:$0x1] }
   0x4   :  { %v22_v10 = vsel %vm21_vm0, %v16_v5, 0.0  ;;  %v23_v11 = vsel %vm21_vm0, %v17_v6, 0.0  ;;  %v25_v12 = vsel %vm21_vm0, %v18_v7, 0.0  ;;  %v51_v33 = vsub.s32 0, %v50_v31 }
   0x5   :  { %v24_v13 = vadd.f32 %v23_v11, %v22_v10  ;;  %v27_v14 = vsel %vm21_vm0, %v19_v8, 0.0  ;;  %v30_v16 = vsel %vm29_vm1, %v20_v9, 0.0 }
   0x7   :  { %v26_v15 = vadd.f32 %v25_v12, %v24_v13 }
   0x9   :  { %v28_v17 = vadd.f32 %v27_v14, %v26_v15 }
   0xb   :  { %v31_v18 = vadd.f32 %v30_v16, %v28_v17 }
   0xd   :  { %v32_v19 = vrot.slane %v31_v18, 4 }
   0xf   :  { %v33_v20 = vadd.f32 %v32_v19, %v31_v18 }
  0x11   :  { %v34_v21 = vrot.slane %v33_v20, 2 }
  0x13   :  { %v35_v22 = vadd.f32 %v34_v21, %v33_v20 }
  0x15   :  { %v36_v23 = vrot.slane %v35_v22, 1 }
  0x17   :  { %v37_v24 = vadd.f32 %v36_v23, %v35_v22 }
  0x19   :  { %68 = vrsqrt.f32 %v37_v24  ;;  %vm40_vm2 = vcmp.eq.f32.partialorder %v37_v24, inf  ;;  %v43_v26 = vand.u32 2147483648, %v37_v24  ;;  %vm42_vm3 = vcmp.eq.f32.partialorder %v37_v24, 0.0 }
  0x26   :  { %v69_v25 = vpop.eup %68 }
  0x27   :  { %v39_v27 = vmul.f32 %v69_v25, %v37_v24 }
  0x29   :  { %v41_v28 = vsel %vm40_vm2, %v37_v24, %v39_v27 }
  0x2a   :  { %v44_v29 = vsel %vm42_vm3, %v43_v26, %v41_v28 }
  0x2b   :  { %70 = vrcp.f32 %v44_v29 }
  0x38   :  { %v71_v34 = vpop.eup %70 }
  0x39   :  { %v47_v35 = vmul.f32 %v71_v34, %v45_v32 }
  0x3b   :  { %v52_v36 = vrot.slane %v47_v35, %v51_v33 }
  0x3d   :  { %v54_v37 = vmul.f32 %v52_v36, %v11_v0  ;;  %v55_v38 = vmul.f32 %v52_v36, %v12_v1  ;;  %v56_v39 = vmul.f32 %v52_v36, %v13_v2  ;;  %v57_v40 = vmul.f32 %v52_v36, %v14_v3 }
  0x3e   :  { %v58_v41 = vmul.f32 %v52_v36, %v15_v4 }
  0x3f   :  { %59 = vst.msk [vmem:[%s132_s2] sm:$0xff] %vm21_vm0, %v54_v37  ;;  %60 = vst.msk [vmem:[%s132_s2 + $0x8] sm:$0xff] %vm21_vm0, %v55_v38 }
  0x40   :  { %61 = vst.msk [vmem:[%s132_s2 + $0x10] sm:$0xff] %vm21_vm0, %v56_v39  ;;  %62 = vst.msk [vmem:[%s132_s2 + $0x18] sm:$0xff] %vm21_vm0, %v57_v40 }
  0x41   :  { %63 = vst.msk [vmem:[%s132_s2 + $0x20] sm:$0xf] %vm29_vm1, %v58_v41 }

</bundles_post_ra>
